<compile_context>
chip_gen: v5e
topology: v5e:2x2
jax: 0.10.0
libtpu: 0.0.40
codegen_flags: <defaults>
</compile_context>

<pallas_src>
import functools

import jax
import jax.numpy as jnp
from jax.experimental import pallas as pl
from jax.experimental.pallas import tpu as pltpu

_VMEM_LIMIT = 32 * 1024 * 1024   # modest; safe on v5e/v6e (128 MiB) and v7x (64 MiB)


# ----------------------------- helpers (run inside kernels) -----------------

def _layernorm(x, w, b, eps=1e-5):
    mu = jnp.mean(x, axis=-1, keepdims=True)
    var = jnp.mean((x - mu) ** 2, axis=-1, keepdims=True)
    return (x - mu) * jax.lax.rsqrt(var + eps) * w + b


def _erf(x):
    # Abramowitz & Stegun 7.1.26 polynomial approximation, |err| <= 1.5e-7.
    # Matches PyTorch's exact (erf-based) nn.GELU to f32 precision; kept in f32.
    a1, a2, a3, a4, a5 = (0.254829592, -0.284496736, 1.421413741,
                          -1.453152027, 1.061405429)
    p = 0.3275911
    s = jnp.where(x >= 0.0, 1.0, -1.0)
    z = jnp.abs(x)
    t = 1.0 / (1.0 + p * z)
    poly = ((((a5 * t + a4) * t + a3) * t + a2) * t + a1) * t
    return s * (1.0 - poly * jnp.exp(-z * z))


def _gelu_exact(x):
    return 0.5 * x * (1.0 + _erf(x * 0.7071067811865476))


# ----------------------------- patch embedding kernel -----------------------

def patch_embed_kernel(x_ref, w_ref, b_ref, o_ref):
    # x_ref: (tm, K) bf16, w_ref: (K, E) bf16, b_ref: (1, E) f32
    o_ref[...] = (
        jnp.dot(x_ref[...], w_ref[...], preferred_element_type=jnp.float32)
        + b_ref[...]
    )


def patch_embed(patches, w, b):
    M, K = patches.shape
    E = w.shape[1]
    tm = M if M <= 512 else 512          # row-tile the patch matmul
    return pl.pallas_call(
        patch_embed_kernel,
        out_shape=jax.ShapeDtypeStruct((M, E), jnp.float32),
        grid=(pl.cdiv(M, tm),),
        in_specs=[
            pl.BlockSpec((tm, K), lambda i: (i, 0)),
            pl.BlockSpec((K, E), lambda i: (0, 0)),
            pl.BlockSpec((1, E), lambda i: (0, 0)),
        ],
        out_specs=pl.BlockSpec((tm, E), lambda i: (i, 0)),
        compiler_params=pltpu.CompilerParams(
            dimension_semantics=("parallel",),
            vmem_limit_bytes=_VMEM_LIMIT),
    )(patches, w, b)


# ----------------------------- fused transformer stack ----------------------

def stack_kernel(num_heads,
                 tok_ref,
                 n1w_ref, n1b_ref, qkvw_ref, projw_ref, projb_ref,
                 n2w_ref, n2b_ref, f1w_ref, f1b_ref, f2w_ref, f2b_ref,
                 fnw_ref, fnb_ref,
                 cls_ref,
                 res_ref):
    layer = pl.program_id(1)

    # Layer 0: load this batch-item's tokens into the resident residual stream.
    @pl.when(layer == 0)
    def _():
        res_ref[...] = tok_ref[0]

    x = res_ref[...]                      # (N, D) f32 residual stream
    N, D = x.shape
    hd = D // num_heads
    scale = float(hd) ** -0.5

    # ---- attention (pre-LN) ----
    h = _layernorm(x, n1w_ref[0], n1b_ref[0])
    qkv = jnp.dot(h.astype(jnp.bfloat16), qkvw_ref[0],
                  preferred_element_type=jnp.float32)            # (N, 3D) f32
    q = qkv[:, :D] * scale                # fold scale into q: (N,D) mul, not (N,N)
    k = qkv[:, D:2 * D]
    v = qkv[:, 2 * D:]

    def split_heads(t):                   # (N, D) -> (num_heads, N, hd)
        return jnp.stack(
            [t[:, i * hd:(i + 1) * hd] for i in range(num_heads)], axis=0)

    qh = split_heads(q).astype(jnp.bfloat16)
    kh = split_heads(k).astype(jnp.bfloat16)
    vh = split_heads(v).astype(jnp.bfloat16)

    # Head-batched attention (single einsum per stage instead of per-head dots).
    s = jnp.einsum('hqd,hkd->hqk', qh, kh,
                   preferred_element_type=jnp.float32)           # (H, N, N) f32
    s = s - jnp.max(s, axis=-1, keepdims=True)
    e = jnp.exp(s)
    p = e * pl.reciprocal(jnp.sum(e, axis=-1, keepdims=True), approx=True)
    ao = jnp.einsum('hqk,hkd->hqd', p.astype(jnp.bfloat16), vh,
                    preferred_element_type=jnp.float32)          # (H, N, hd) f32

    # merge heads (head-major lane order, as in PyTorch .transpose(1,2).reshape)
    merged = jnp.concatenate([ao[i] for i in range(num_heads)], axis=-1)
    y = jnp.dot(merged.astype(jnp.bfloat16), projw_ref[0],
                preferred_element_type=jnp.float32) + projb_ref[0]
    x = x + y

    # ---- MLP (pre-LN) ----
    h2 = _layernorm(x, n2w_ref[0], n2b_ref[0])
    m = jnp.dot(h2.astype(jnp.bfloat16), f1w_ref[0],
                preferred_element_type=jnp.float32) + f1b_ref[0]
    m = _gelu_exact(m)                    # GELU kept in f32
    m = jnp.dot(m.astype(jnp.bfloat16), f2w_ref[0],
                preferred_element_type=jnp.float32) + f2b_ref[0]
    x = x + m

    res_ref[...] = x                      # residual stays resident in VMEM

    # Last layer: final LayerNorm on the CLS row only (== norm(x)[:, 0]).
    @pl.when(layer == pl.num_programs(1) - 1)
    def _():
        cls_ref[0] = _layernorm(x[0:1, :], fnw_ref[...], fnb_ref[...])


def transformer_stack(tok, params, num_heads):
    B, N, D = tok.shape
    depth = params["qkv_w"].shape[0]
    Hm = params["fc1_w"].shape[2]
    kernel = functools.partial(stack_kernel, num_heads)

    def layer_spec(shape):
        # Per-layer stacked weight: block index follows the depth grid axis, so
        # layer l+1's weights are prefetched while layer l computes.
        nz = len(shape) - 1
        return pl.BlockSpec((1,) + tuple(shape[1:]),
                            lambda b, l: (l,) + (0,) * nz)

    out = pl.pallas_call(
        kernel,
        out_shape=jax.ShapeDtypeStruct((B, 1, D), jnp.float32),
        grid=(B, depth),
        in_specs=[
            pl.BlockSpec((1, N, D), lambda b, l: (b, 0, 0)),   # tokens (read @ l=0)
            layer_spec((depth, 1, D)),                          # n1_w
            layer_spec((depth, 1, D)),                          # n1_b
            layer_spec((depth, D, 3 * D)),                      # qkv_w (bf16)
            layer_spec((depth, D, D)),                          # proj_w (bf16)
            layer_spec((depth, 1, D)),                          # proj_b
            layer_spec((depth, 1, D)),                          # n2_w
            layer_spec((depth, 1, D)),                          # n2_b
            layer_spec((depth, D, Hm)),                         # fc1_w (bf16)
            layer_spec((depth, 1, Hm)),                         # fc1_b
            layer_spec((depth, Hm, D)),                         # fc2_w (bf16)
            layer_spec((depth, 1, D)),                          # fc2_b
            pl.BlockSpec((1, D), lambda b, l: (0, 0)),          # final norm_w
            pl.BlockSpec((1, D), lambda b, l: (0, 0)),          # final norm_b
        ],
        out_specs=pl.BlockSpec((1, 1, D), lambda b, l: (b, 0, 0)),
        scratch_shapes=[pltpu.VMEM((N, D), jnp.float32)],       # resident residual
        compiler_params=pltpu.CompilerParams(
            dimension_semantics=("parallel", "arbitrary"),
            vmem_limit_bytes=_VMEM_LIMIT),
    )(tok,
      params["n1_w"], params["n1_b"], params["qkv_w"], params["proj_w"],
      params["proj_b"], params["n2_w"], params["n2_b"], params["fc1_w"],
      params["fc1_b"], params["fc2_w"], params["fc2_b"],
      params["norm_w"], params["norm_b"])
    return out[:, 0, :]                                         # (B, D)


# ----------------------------- parameters & forward --------------------------

def init_params(key, in_chans, patch, embed_dim, depth, num_heads, mlp_ratio,
                num_patches):
    D = embed_dim
    Hm = int(D * mlp_ratio)
    keys = jax.random.split(key, 8)
    bf16 = jnp.bfloat16
    # Matmul weights stored in bf16 (MXU-native, halves HBM/VMEM traffic);
    # biases / LN params / residual stream stay f32.  Linear weights are stored
    # already transposed to (in, out) layout; per-layer weights are stacked on a
    # leading `depth` axis so the fused stack kernel can index them by layer.
    return {
        "patch_w": (jax.random.normal(keys[0], (D, in_chans, patch, patch),
                                      jnp.float32) * 0.02).astype(bf16),
        "patch_b": jnp.zeros((1, D), jnp.float32),
        "cls_token": jax.random.normal(keys[1], (1, 1, D), jnp.float32) * 0.02,
        "pos_embed": jax.random.normal(keys[2], (1, num_patches + 1, D),
                                       jnp.float32) * 0.02,
        "norm_w": jnp.ones((1, D), jnp.float32),
        "norm_b": jnp.zeros((1, D), jnp.float32),
        "n1_w": jnp.ones((depth, 1, D), jnp.float32),
        "n1_b": jnp.zeros((depth, 1, D), jnp.float32),
        "qkv_w": (jax.random.normal(keys[3], (depth, D, 3 * D), jnp.float32)
                  * 0.02).astype(bf16),
        "proj_w": (jax.random.normal(keys[4], (depth, D, D), jnp.float32)
                   * 0.02).astype(bf16),
        "proj_b": jnp.zeros((depth, 1, D), jnp.float32),
        "n2_w": jnp.ones((depth, 1, D), jnp.float32),
        "n2_b": jnp.zeros((depth, 1, D), jnp.float32),
        "fc1_w": (jax.random.normal(keys[5], (depth, D, Hm), jnp.float32)
                  * 0.02).astype(bf16),
        "fc1_b": jnp.zeros((depth, 1, Hm), jnp.float32),
        "fc2_w": (jax.random.normal(keys[6], (depth, Hm, D), jnp.float32)
                  * 0.02).astype(bf16),
        "fc2_b": jnp.zeros((depth, 1, D), jnp.float32),
    }


def vit_forward(x, params, patch, num_heads):
    B, C, H, W = x.shape
    hp, wp = H // patch, W // patch
    num_patches = hp * wp
    D = params["cls_token"].shape[-1]

    # Conv2d(kernel=stride=patch)  ==  extract patches (c, kh, kw order) + matmul.
    patches = (x.reshape(B, C, hp, patch, wp, patch)
                 .transpose(0, 2, 4, 1, 3, 5)
                 .reshape(B * num_patches, C * patch * patch)
                 .astype(jnp.bfloat16))
    w_flat = params["patch_w"].reshape(D, -1).T          # (K, D) bf16

    emb = patch_embed(patches, w_flat, params["patch_b"])  # (B*P, D) f32
    tokens = emb.reshape(B, num_patches, D)

    cls = jnp.broadcast_to(params["cls_token"], (B, 1, D))
    tok = jnp.concatenate([cls, tokens], axis=1) + params["pos_embed"]

    # Fused stack: all blocks + final CLS LayerNorm in one pallas_call.
    return transformer_stack(tok, params, num_heads)      # (B, D) == norm(x)[:, 0]


# ----------------------------- main ------------------------------------------

if __name__ == "__main__":
    # Small ViT consistent with the module: patch=16; D kept a multiple of 128
    # so the embed dim is lane-dense on TPU.  img=32 -> 4 patches + CLS = 5 tokens.
    B, C, H, W = 2, 3, 32, 32
    patch = 16
    embed_dim = 128
    depth = 2
    num_heads = 4
    mlp_ratio = 4.0
    num_patches = (H // patch) * (W // patch)

    key = jax.random.PRNGKey(0)
    kx, kp = jax.random.split(key)
    x = jax.random.normal(kx, (B, C, H, W), jnp.float32)
    params = init_params(kp, C, patch, embed_dim, depth, num_heads, mlp_ratio,
                         num_patches)

    out = vit_forward(x, params, patch, num_heads)        # (B, embed_dim)
    out = jax.block_until_ready(out)
    assert out.shape == (B, embed_dim)
    assert bool(jnp.all(jnp.isfinite(out)))
    print("KERNEL_OK")
</pallas_src>

<mosaic_0001>
module attributes {stable_mosaic.version = 11 : i64} {
  func.func @patch_embed_kernel(%arg0: i32, %arg1: memref<8x768xbf16, #tpu.memory_space<vmem>>, %arg2: memref<768x128xbf16, #tpu.memory_space<vmem>>, %arg3: memref<1x128xf32, #tpu.memory_space<vmem>>, %arg4: memref<8x128xf32, #tpu.memory_space<vmem>>) attributes {dimension_semantics = [#tpu.dimension_semantics<parallel>], iteration_bounds = array<i64: 1>, scalar_prefetch = 0 : i64, scratch_operands = 0 : i64, tpu.core_type = #tpu.core_type<tc>, window_params = [{transform_indices = @transform_0, window_bounds = array<i64: 8, 768>}, {pipeline_mode = #tpu.pipeline_mode<synchronous>, transform_indices = @transform_1, window_bounds = array<i64: 768, 128>}, {pipeline_mode = #tpu.pipeline_mode<synchronous>, transform_indices = @transform_2, window_bounds = array<i64: 1, 128>}, {transform_indices = @transform_3, window_bounds = array<i64: 8, 128>}]} {
    %c0 = arith.constant 0 : index
    %c0_0 = arith.constant 0 : index
    %0 = vector.load %arg1[%c0, %c0_0] : memref<8x768xbf16, #tpu.memory_space<vmem>>, vector<8x768xbf16>
    %c0_1 = arith.constant 0 : index
    %c0_2 = arith.constant 0 : index
    %1 = vector.load %arg2[%c0_1, %c0_2] : memref<768x128xbf16, #tpu.memory_space<vmem>>, vector<768x128xbf16>
    %cst = arith.constant dense<0.000000e+00> : vector<8x128xf32>
    %2 = tpu.matmul %0, %1, %cst {dimension_numbers = #tpu.dot_dimension_numbers<[1], [0], [0], [1], [0, 0, 1, 1], [], []>} : vector<8x768xbf16>, vector<768x128xbf16>, vector<8x128xf32> -> vector<8x128xf32>
    %c0_3 = arith.constant 0 : index
    %c0_4 = arith.constant 0 : index
    %3 = vector.load %arg3[%c0_3, %c0_4] : memref<1x128xf32, #tpu.memory_space<vmem>>, vector<1x128xf32>
    %4 = vector.broadcast %3 : vector<1x128xf32> to vector<8x128xf32>
    %5 = arith.addf %2, %4 : vector<8x128xf32>
    %c0_5 = arith.constant 0 : index
    %c0_6 = arith.constant 0 : index
    %6 = vector.load %arg4[%c0_5, %c0_6] : memref<8x128xf32, #tpu.memory_space<vmem>>, vector<8x128xf32>
    tpu.vector_store %arg4[%c0_5, %c0_6], %5 {strides = array<i32>} : memref<8x128xf32, #tpu.memory_space<vmem>>, vector<8x128xf32>,
    return
  }
  func.func @transform_0(%arg0: i32) -> (i32, i32) {
    %c0_i32 = arith.constant 0 : i32
    %c0_i32_0 = arith.constant 0 : i32
    return %arg0, %c0_i32 : i32, i32
  }
  func.func @transform_1(%arg0: i32) -> (i32, i32) {
    %c0_i32 = arith.constant 0 : i32
    %c0_i32_0 = arith.constant 0 : i32
    %c0_i32_1 = arith.constant 0 : i32
    return %c0_i32, %c0_i32_0 : i32, i32
  }
  func.func @transform_2(%arg0: i32) -> (i32, i32) {
    %c0_i32 = arith.constant 0 : i32
    %c0_i32_0 = arith.constant 0 : i32
    %c0_i32_1 = arith.constant 0 : i32
    return %c0_i32, %c0_i32_0 : i32, i32
  }
  func.func @transform_3(%arg0: i32) -> (i32, i32) {
    %c0_i32 = arith.constant 0 : i32
    %c0_i32_0 = arith.constant 0 : i32
    return %arg0, %c0_i32 : i32, i32
  }
}

</mosaic_0001>

<bundles_post_ra>
// kernel: tpu_custom_call.1
= control target key start
LH: loop header
LB: loop body
LE: loop exit
PB: predicated region body
PF: predicated region fallthrough
CT: control target
= control target key end

     0   :  { %8 = vsyncpa [#allocation3], 0  ;;  %s915_s0 = inlined_call_operand.hbm [shape: bf16[8,768], index: 0, kind: input, shape index: {}]   ;;  %s916_s1 = inlined_call_operand.hbm [shape: bf16[768,128], index: 1, kind: input, shape index: {}]   ;;  %s917_s2 = inlined_call_operand.vmem [shape: f32[1,128], index: 2, kind: input, shape index: {}]   ;;  %s918_s3 = inlined_call_operand.hbm [shape: f32[8,128], index: 3, kind: output, shape index: {}]  }
   0x1   :  { %9 = vsyncpa [#allocation6], 0 }
   0x2   :  { %10 = vsyncpa [#allocation4], 0  ;;  %s16_s14 = sshll.u32 %s915_s0, 4  ;;  %s878_s15 = smov [#allocation2]   ;;  %s17_s14 = int_to_ptr.hbm [resolvable:$true] %s16_s14 }
   0x3   :  { %s18_s16 = sshll.u32 %s878_s15, 4  ;;  %s26_s19 = sshll.u32 %s916_s1, 4  ;;  %s19_s16 = int_to_ptr.vmem [resolvable:$true] %s18_s16  ;;  %s27_s19 = int_to_ptr.hbm [resolvable:$true] %s26_s19 }
   0x4   :  { %21 = dma.hbm_to_vmem [thread:$0]  %s17_s14, 384, %s19_s16, [#allocation3]  }
   0x5   :  { %s879_s20 = smov [#allocation5]   ;;  %s880_s22 = smov 64  }
   0x6   :  { %s28_s21 = sshll.u32 %s879_s20, 4  ;;  %s881_s23 = smov 4   ;;  %s29_s21 = int_to_ptr.vmem [resolvable:$true] %s28_s21 }
   0x7   :  { %34 = dma.hbm_to_vmem [thread:$0]  %s27_s19, 6144, %s29_s21, [#allocation6], %s880_s22, %s880_s22, %s881_s23  }
   0x8   :  { %872 = dma.done.wait [#allocation3], 384  }
   0x9   :  { %873 = vsyncadd [#allocation3], 4294966912 }
   0xa   :  { %874 = dma.done.wait [#allocation6], 6144  }
   0xb   :  { %875 = vsyncadd [#allocation6], 4294961152  ;;  %v753_v0 = vld [vmem:[#allocation5 + $0x38] sm:$0xff]  ;;  %v752_v2 = vld [vmem:[#allocation5 + $0x30] sm:$0xff]  ;;  %s882_s24 = smov [#allocation7]   ;;  %s543_s28 = sshll.u32 %s918_s3, 4  ;;  %s544_s28 = int_to_ptr.hbm [resolvable:$true] %s543_s28 }
   0xc   :  { %v761_v1 = vld [vmem:[#allocation5 + $0x78] sm:$0xff]  ;;  %457 = vmatpush.bf16.msra.mxu0 %v753_v0  ;;  %v760_v3 = vld [vmem:[#allocation5 + $0x70] sm:$0xff]  ;;  %v751_v8 = vld [vmem:[#allocation5 + $0x28] sm:$0xff]  ;;  %s541_s25 = sshll.u32 %s882_s24, 4  ;;  %s542_s25 = int_to_ptr.vmem [resolvable:$true] %s541_s25 }
   0xd   :  { %470 = vmatpush.bf16.msra.mxu1 %v761_v1  ;;  %v769_v4 = vld [vmem:[#allocation5 + $0xb8] sm:$0xff]  ;;  %v768_v6 = vld [vmem:[#allocation5 + $0xb0] sm:$0xff]  ;;  %v759_v9 = vld [vmem:[#allocation5 + $0x68] sm:$0xff] }
   0xe   :  { %v777_v5 = vld [vmem:[#allocation5 + $0xf8] sm:$0xff]  ;;  %483 = vmatpush.bf16.msra.mxu2 %v769_v4  ;;  %v776_v7 = vld [vmem:[#allocation5 + $0xf0] sm:$0xff]  ;;  %v767_v10 = vld [vmem:[#allocation5 + $0xa8] sm:$0xff] }
   0xf   :  { %496 = vmatpush.bf16.msra.mxu3 %v777_v5  ;;  %v775_v11 = vld [vmem:[#allocation5 + $0xe8] sm:$0xff]  ;;  %v750_v12 = vld [vmem:[#allocation5 + $0x20] sm:$0xff]  ;;  %v749_v16 = vld [vmem:[#allocation5 + $0x18] sm:$0xff] }
  0x10   :  { %458 = vmatpush.bf16.msra.mxu0 %v752_v2  ;;  %v758_v13 = vld [vmem:[#allocation5 + $0x60] sm:$0xff]  ;;  %v757_v17 = vld [vmem:[#allocation5 + $0x58] sm:$0xff]  ;;  %v748_v20 = vld [vmem:[#allocation5 + $0x10] sm:$0xff] }
  0x11   :  { %471 = vmatpush.bf16.msra.mxu1 %v760_v3  ;;  %v766_v14 = vld [vmem:[#allocation5 + $0xa0] sm:$0xff]  ;;  %v765_v18 = vld [vmem:[#allocation5 + $0x98] sm:$0xff]  ;;  %v756_v21 = vld [vmem:[#allocation5 + $0x50] sm:$0xff] }
  0x12   :  { %484 = vmatpush.bf16.msra.mxu2 %v768_v6  ;;  %v774_v15 = vld [vmem:[#allocation5 + $0xe0] sm:$0xff]  ;;  %v773_v19 = vld [vmem:[#allocation5 + $0xd8] sm:$0xff]  ;;  %v764_v22 = vld [vmem:[#allocation5 + $0x90] sm:$0xff] }
  0x13   :  { %497 = vmatpush.bf16.msra.mxu3 %v776_v7  ;;  %v772_v23 = vld [vmem:[#allocation5 + $0xd0] sm:$0xff]  ;;  %v747_v24 = vld [vmem:[#allocation5 + $0x8] sm:$0xff]  ;;  %v746_v32 = vld [vmem:[#allocation5] sm:$0xff] }
  0x14   :  { %459 = vmatpush.bf16.msra.mxu0 %v751_v8  ;;  %v755_v25 = vld [vmem:[#allocation5 + $0x48] sm:$0xff]  ;;  %v46_v31 = vld [vmem:[#allocation2 + $0x8] sm:$0xff]  ;;  %v754_v33 = vld [vmem:[#allocation5 + $0x40] sm:$0xff] }
  0x15   :  { %472 = vmatpush.bf16.msra.mxu1 %v759_v9  ;;  %v45_v26 = vld [vmem:[#allocation2] sm:$0xff]  ;;  %v785_v34 = vld [vmem:[#allocation5 + $0x138] sm:$0xff]  ;;  %v762_v36 = vld [vmem:[#allocation5 + $0x80] sm:$0xff]  ;;  %v153_v38 = vunpack.c.l.b16 %v46_v31  ;;  %v154_v39 = vunpack.c.h.b16 %v46_v31 }
  0x16   :  { %485 = vmatpush.bf16.msra.mxu2 %v767_v10  ;;  %v763_v27 = vld [vmem:[#allocation5 + $0x88] sm:$0xff]  ;;  %v151_v29 = vunpack.c.l.b16 %v45_v26  ;;  %v152_v30 = vunpack.c.h.b16 %v45_v26  ;;  %v793_v35 = vld [vmem:[#allocation5 + $0x178] sm:$0xff]  ;;  %v770_v37 = vld [vmem:[#allocation5 + $0xc0] sm:$0xff] }
  0x17   :  { %498 = vmatpush.bf16.msra.mxu3 %v775_v11  ;;  %v771_v28 = vld [vmem:[#allocation5 + $0xc8] sm:$0xff]  ;;  %v784_v42 = vld [vmem:[#allocation5 + $0x130] sm:$0xff]  ;;  %v159_v44 = vpack.c.b16 %v153_v38, %v153_v38  ;;  %v160_v45 = vpack.c.b16 %v154_v39, %v154_v39  ;;  %v782_v48 = vld [vmem:[#allocation5 + $0x120] sm:$0xff] }
  0x18   :  { %460 = vmatpush.bf16.msra.mxu0 %v750_v12  ;;  %v157_v40 = vpack.c.b16 %v151_v29, %v151_v29  ;;  %v158_v41 = vpack.c.b16 %v152_v30, %v152_v30  ;;  %v792_v43 = vld [vmem:[#allocation5 + $0x170] sm:$0xff]  ;;  %v783_v46 = vld [vmem:[#allocation5 + $0x128] sm:$0xff]  ;;  %v790_v49 = vld [vmem:[#allocation5 + $0x160] sm:$0xff] }
  0x19   :  { %473 = vmatpush.bf16.msra.mxu1 %v758_v13  ;;  %v791_v47 = vld [vmem:[#allocation5 + $0x168] sm:$0xff]  ;;  %v781_v50 = vld [vmem:[#allocation5 + $0x118] sm:$0xff]  ;;  %v780_v52 = vld [vmem:[#allocation5 + $0x110] sm:$0xff] }
  0x1a   :  { %486 = vmatpush.bf16.msra.mxu2 %v766_v14  ;;  %v789_v51 = vld [vmem:[#allocation5 + $0x158] sm:$0xff]  ;;  %v788_v53 = vld [vmem:[#allocation5 + $0x150] sm:$0xff]  ;;  %v779_v54 = vld [vmem:[#allocation5 + $0x108] sm:$0xff] }
  0x1b   :  { %499 = vmatpush.bf16.msra.mxu3 %v774_v15  ;;  %v787_v55 = vld [vmem:[#allocation5 + $0x148] sm:$0xff]  ;;  %v47_v56 = vld [vmem:[#allocation2 + $0x10] sm:$0xff]  ;;  %v778_v59 = vld [vmem:[#allocation5 + $0x100] sm:$0xff] }
  0x1c   :  { %461 = vmatpush.bf16.msra.mxu0 %v749_v16  ;;  %v155_v57 = vunpack.c.l.b16 %v47_v56  ;;  %v156_v58 = vunpack.c.h.b16 %v47_v56  ;;  %v786_v60 = vld [vmem:[#allocation5 + $0x140] sm:$0xff]  ;;  %v799_v5 = vld [vmem:[%s917_s2] ss:$0 sm:$0xff] }
  0x1d   :  { %474 = vmatpush.bf16.msra.mxu1 %v757_v17 }
  0x1e   :  { %487 = vmatpush.bf16.msra.mxu2 %v765_v18  ;;  %v161_v61 = vpack.c.b16 %v155_v57, %v155_v57  ;;  %v162_v62 = vpack.c.b16 %v156_v58, %v156_v58 }
  0x1f   :  { %500 = vmatpush.bf16.msra.mxu3 %v773_v19 }
  0x20   :  { %462 = vmatpush.bf16.msra.mxu0 %v748_v20 }
  0x21   :  { %475 = vmatpush.bf16.msra.mxu1 %v756_v21 }
  0x22   :  { %488 = vmatpush.bf16.msra.mxu2 %v764_v22 }
  0x23   :  { %501 = vmatpush.bf16.msra.mxu3 %v772_v23 }
  0x24   :  { %463 = vmatpush.bf16.msra.mxu0 %v747_v24 }
  0x25   :  { %476 = vmatpush.bf16.msra.mxu1 %v755_v25 }
  0x26   :  { %489 = vmatpush.bf16.msra.mxu2 %v763_v27 }
  0x27   :  { %502 = vmatpush.bf16.msra.mxu3 %v771_v28 }
  0x28   :  { %464 = vmatpush.bf16.msra.mxu0 %v746_v32 }
  0x29   :  { %477 = vmatpush.bf16.msra.mxu1 %v754_v33 }
  0x2a   :  { %490 = vmatpush.bf16.msra.mxu2 %v762_v36 }
  0x2b   :  { %503 = vmatpush.bf16.msra.mxu3 %v770_v37  ;;  %465 = vmatmul.bf16.vlgmr.msra.gmra.mxu0 %v157_v40 }
  0x2c   :  { %509 = vmatpush.bf16.msrb.mxu0 %v785_v34  ;;  %478 = vmatmul.bf16.vlgmr.msra.gmra.mxu1 %v158_v41 }
  0x2d   :  { %522 = vmatpush.bf16.msrb.mxu1 %v793_v35  ;;  %491 = vmatmul.bf16.vlgmr.msra.gmra.mxu2 %v159_v44 }
  0x2e   :  { %504 = vmatmul.bf16.vlgmr.msra.gmra.mxu3 %v160_v45 }
  0x30   :  { %510 = vmatpush.bf16.msrb.mxu0 %v784_v42 }
  0x31   :  { %523 = vmatpush.bf16.msrb.mxu1 %v792_v43 }
  0x34   :  { %511 = vmatpush.bf16.msrb.mxu0 %v783_v46 }
  0x35   :  { %524 = vmatpush.bf16.msrb.mxu1 %v791_v47 }
  0x38   :  { %512 = vmatpush.bf16.msrb.mxu0 %v782_v48 }
  0x39   :  { %525 = vmatpush.bf16.msrb.mxu1 %v790_v49 }
  0x3c   :  { %513 = vmatpush.bf16.msrb.mxu0 %v781_v50 }
  0x3d   :  { %526 = vmatpush.bf16.msrb.mxu1 %v789_v51 }
  0x40   :  { %514 = vmatpush.bf16.msrb.mxu0 %v780_v52 }
  0x41   :  { %527 = vmatpush.bf16.msrb.mxu1 %v788_v53 }
  0x44   :  { %515 = vmatpush.bf16.msrb.mxu0 %v779_v54 }
  0x45   :  { %528 = vmatpush.bf16.msrb.mxu1 %v787_v55 }
  0x48   :  { %516 = vmatpush.bf16.msrb.mxu0 %v778_v59 }
  0x49   :  { %529 = vmatpush.bf16.msrb.mxu1 %v786_v60 }
  0x4b   :  { %517 = vmatmul.bf16.vlgmr.msrb.gmra.mxu0 %v161_v61 }
  0x4c   :  { %530 = vmatmul.bf16.vlgmr.msrb.gmra.mxu1 %v162_v62 }
  0xa8   :  { %v466_v63 = vpop.f32.mrf.mxu0 }
  0xa9   :  { %v479_v0 = vpop.f32.mrf.mxu1  ;;  %v467_v6 = vadd.f32 %v799_v5, %v466_v63 }
  0xab   :  { %v480_v9 = vadd.f32 %v479_v0, %v467_v6 }
  0xb0   :  { %v468_v1 = vpop.f32.mrf.mxu0  ;;  %v492_v3 = vpop.f32.mrf.mxu2 }
  0xb1   :  { %v481_v2 = vpop.f32.mrf.mxu1  ;;  %v505_v4 = vpop.f32.mrf.mxu3  ;;  %v493_v10 = vadd.f32 %v492_v3, %v480_v9 }
  0xb3   :  { %v506_v11 = vadd.f32 %v505_v4, %v493_v10 }
  0xb8   :  { %v494_v7 = vpop.f32.mrf.mxu2 }
  0xb9   :  { %v507_v8 = vpop.f32.mrf.mxu3 }
  0xc8   :  { %v518_v12 = vpop.f32.mrf.mxu0 }
  0xc9   :  { %v531_v13 = vpop.f32.mrf.mxu1  ;;  %v519_v14 = vadd.f32 %v518_v12, %v506_v11 }
  0xcb   :  { %v532_v15 = vadd.f32 %v531_v13, %v519_v14 }
  0xcd   :  { %535 = vst [vmem:[#allocation7] sm:$0xff] %v532_v15 }
  0xce   :  { %546 = dma.vmem_to_hbm [thread:$0]  %s542_s25, 128, %s544_s28, [#allocation4]  }
  0xd0   :  { %v520_v16 = vpop.f32.mrf.mxu0 }
  0xd1   :  { %v533_v17 = vpop.f32.mrf.mxu1 }
  0xd2   :  { %876 = dma.done.wait [#allocation4], 128  }
  0xd3   :  { %877 = vsyncadd [#allocation4], 4294967168 }
  0xd4   :  { %551 = vsyncpa [#allocation3], 1 }
  0xd5   :  { %552 = vsyncpa [#allocation6], 1 }
  0xd6   :  { %553 = vsyncpa [#allocation4], 1 }

</bundles_post_ra>
